<compile_context>
chip_gen: v5e
topology: v5e:2x2
jax: 0.10.0
libtpu: 0.0.40
codegen_flags: <defaults>
</compile_context>

<pallas_src>
import functools

import jax
import jax.numpy as jnp
from jax.experimental import pallas as pl
from jax.experimental.pallas import tpu as pltpu

_LANES = 128
_MAX_BLOCK_ROWS = 4096  # f32: 4096*128*4 B = 2 MiB per input block.


def _l1_partial_kernel(x_ref, y_ref, o_ref, *, block_rows, total_rows,
                       blocks_per_split, needs_mask):
    """Accumulates (8, 128) vector partial sums of |x - y| into o_ref.

    o_ref's block index depends only on the outer ("parallel") grid axis, so
    it stays resident in VMEM across the inner ("arbitrary") reduction axis
    and acts as the accumulator.  All in-loop arithmetic is VPU adds; the
    final cross-sublane/lane reduce is deferred to the (tiny) JAX epilogue.
    """
    i = pl.program_id(1)

    @pl.when(i == 0)
    def _init():
        o_ref[...] = jnp.zeros_like(o_ref)

    x = x_ref[...]
    y = y_ref[...]
    if x.dtype != jnp.float32:
        x = x.astype(jnp.float32)
    if y.dtype != jnp.float32:
        y = y.astype(jnp.float32)
    diff = jnp.abs(x - y)

    if needs_mask:
        # Ragged last block and/or overflow blocks from the 2-way split:
        # zero out rows whose global row index is past the real extent.
        blk = pl.program_id(0) * blocks_per_split + i
        row_ids = blk * block_rows + jax.lax.broadcasted_iota(
            jnp.int32, (block_rows, _LANES), 0)
        diff = jnp.where(row_ids < total_rows, diff, jnp.float32(0.0))

    # Fold the block rows down to one vreg-shaped (8, 128) partial: reducing
    # over the leading axis is plain vreg-wise VPU adds (no XLU in hot loop).
    partial = jnp.sum(diff.reshape(block_rows // 8, 8, _LANES), axis=0)
    o_ref[0] += partial


@jax.jit
def l1_loss_pallas(outputs: jax.Array, targets: jax.Array) -> jax.Array:
    """mean(|outputs - targets|) — equivalent to torch.nn.L1Loss()(outputs, targets)."""
    assert outputs.shape == targets.shape, "outputs/targets shape mismatch"
    n_elem = outputs.size

    x = outputs.reshape(-1)
    y = targets.reshape(-1)

    # dtype-aware row alignment so sub-32-bit inputs keep native packed tiles:
    # 8 rows (f32), 16 (bf16/f16), 32 (int8/fp8).
    itemsize = jnp.dtype(outputs.dtype).itemsize
    rows_align = max(8, 32 // itemsize)
    chunk = rows_align * _LANES

    n_main = (n_elem // chunk) * chunk
    total = jnp.float32(0.0)

    if n_main > 0:
        rows = n_main // _LANES                      # multiple of rows_align
        block_rows = min(_MAX_BLOCK_ROWS, rows)      # multiple of rows_align
        n_blocks = (rows + block_rows - 1) // block_rows
        num_splits = 2 if n_blocks >= 2 else 1       # dual-TC split on v7x
        blocks_per_split = (n_blocks + num_splits - 1) // num_splits
        needs_mask = (num_splits * blocks_per_split * block_rows) != rows

        if n_main == n_elem:
            x2 = x.reshape(rows, _LANES)             # pure reshape, no copy
            y2 = y.reshape(rows, _LANES)
        else:
            x2 = x[:n_main].reshape(rows, _LANES)
            y2 = y[:n_main].reshape(rows, _LANES)

        def in_map(p, i):
            # Clamp so overflow blocks of the 2-way split re-read the last
            # real block; their contribution is masked to zero in the kernel.
            return (jnp.minimum(p * blocks_per_split + i, n_blocks - 1), 0)

        kernel = functools.partial(
            _l1_partial_kernel,
            block_rows=block_rows,
            total_rows=rows,
            blocks_per_split=blocks_per_split,
            needs_mask=needs_mask,
        )

        partials = pl.pallas_call(
            kernel,
            out_shape=jax.ShapeDtypeStruct((num_splits, 8, _LANES), jnp.float32),
            grid_spec=pltpu.PrefetchScalarGridSpec(
                num_scalar_prefetch=0,
                grid=(num_splits, blocks_per_split),
                in_specs=[
                    pl.BlockSpec((block_rows, _LANES), in_map),
                    pl.BlockSpec((block_rows, _LANES), in_map),
                ],
                out_specs=pl.BlockSpec((1, 8, _LANES), lambda p, i: (p, 0, 0)),
            ),
            compiler_params=pltpu.CompilerParams(
                dimension_semantics=("parallel", "arbitrary")),
        )(x2, y2)

        # Single deferred cross-sublane/lane reduce over a tiny array.
        total = total + jnp.sum(partials)

    tail = n_elem - n_main
    if tail:
        # Ragged tail (< rows_align*128 elements): negligible, handled in JAX
        # instead of padding/copying both full operands in HBM.
        xt = x[n_main:].astype(jnp.float32)
        yt = y[n_main:].astype(jnp.float32)
        total = total + jnp.sum(jnp.abs(xt - yt))

    return total / jnp.float32(n_elem)


class SetCriterion:
    """JAX/Pallas port of FuGCN's SetCriterion loss wrapper.

    forward(outputs, targets) applies every loss in `self.losses` and returns
    a dict {loss_name: value}.  For the 'Loss' entry (the FuGCN pixel loss),
    the reduction runs inside the Pallas kernel above.
    """

    def __init__(self, losses, weight_dict):
        self.weight_dict = weight_dict
        self.losses = losses
        self.loss_dicts = {}

    def __call__(self, outputs, targets, *args, **kwargs):
        return self.forward(outputs, targets, *args, **kwargs)

    def forward(self, outputs, targets, *args, **kwargs):
        # TODO(synk): the DETR hungarian-matching losses are not used in the
        # FuGCN config (losses == {'Loss': pixel_loss}); non-'Loss' entries
        # are invoked as plain callables.
        for k in self.losses.keys():
            loss = self.losses[k]
            if k == 'Loss':
                loss_dicts = loss(outputs, targets)
            else:
                loss_dicts = loss(outputs, targets, *args)
            if isinstance(loss_dicts, dict):
                self.loss_dicts.update(loss_dicts)
            else:
                self.loss_dicts.update({k: loss_dicts})
        return self.loss_dicts


if __name__ == "__main__":
    key = jax.random.PRNGKey(0)
    k1, k2 = jax.random.split(key)

    # layout: NCHW (B=2, C=4, H=16, W=16), matching the PyTorch module inputs.
    B, C, H, W = 2, 4, 16, 16
    outputs = jax.random.normal(k1, (B, C, H, W), dtype=jnp.float32)
    targets = jax.random.normal(k2, (B, C, H, W), dtype=jnp.float32)

    criterion = SetCriterion(
        losses={'Loss': l1_loss_pallas},
        weight_dict={'Loss': 1.0},
    )

    loss_dicts = criterion(outputs, targets)
    loss_val = jax.block_until_ready(loss_dicts['Loss'])

    # Sanity check against the pure-JAX reference.
    ref = jnp.mean(jnp.abs(outputs - targets))
    assert jnp.allclose(loss_val, ref, atol=1e-5, rtol=1e-5), (loss_val, ref)

    print("KERNEL_OK")
</pallas_src>

<mosaic_0001>
module attributes {stable_mosaic.version = 11 : i64} {
  func.func @_l1_partial_kernel(%arg0: i32, %arg1: i32, %arg2: memref<16x128xf32, #tpu.memory_space<vmem>>, %arg3: memref<16x128xf32, #tpu.memory_space<vmem>>, %arg4: memref<1x8x128xf32, #tpu.memory_space<vmem>>) attributes {dimension_semantics = [#tpu.dimension_semantics<parallel>, #tpu.dimension_semantics<arbitrary>], iteration_bounds = array<i64: 1, 1>, scalar_prefetch = 0 : i64, scratch_operands = 0 : i64, tpu.core_type = #tpu.core_type<tc>, window_params = [{transform_indices = @transform_0, window_bounds = array<i64: 16, 128>}, {transform_indices = @transform_1, window_bounds = array<i64: 16, 128>}, {transform_indices = @transform_2, window_bounds = array<i64: 1, 8, 128>}]} {
    %c0_i32 = arith.constant 0 : i32
    %0 = arith.cmpi eq, %arg1, %c0_i32 : i32
    %1 = arith.extui %0 : i1 to i32
    %c0_i32_0 = arith.constant 0 : i32
    %2 = arith.cmpi ne, %1, %c0_i32_0 : i32
    scf.if %2 {
      %cst_10 = arith.constant 0.000000e+00 : f32
      %15 = vector.broadcast %cst_10 : f32 to vector<1x8x128xf32>
      %c0_11 = arith.constant 0 : index
      %c0_12 = arith.constant 0 : index
      %c0_13 = arith.constant 0 : index
      %16 = vector.load %arg4[%c0_11, %c0_12, %c0_13] : memref<1x8x128xf32, #tpu.memory_space<vmem>>, vector<1x8x128xf32>
      tpu.vector_store %arg4[%c0_11, %c0_12, %c0_13], %15 {strides = array<i32>} : memref<1x8x128xf32, #tpu.memory_space<vmem>>, vector<1x8x128xf32>,
    } else {
    }
    %c0 = arith.constant 0 : index
    %c0_1 = arith.constant 0 : index
    %3 = vector.load %arg2[%c0, %c0_1] : memref<16x128xf32, #tpu.memory_space<vmem>>, vector<16x128xf32>
    %c0_2 = arith.constant 0 : index
    %c0_3 = arith.constant 0 : index
    %4 = vector.load %arg3[%c0_2, %c0_3] : memref<16x128xf32, #tpu.memory_space<vmem>>, vector<16x128xf32>
    %5 = arith.subf %3, %4 : vector<16x128xf32>
    %6 = math.absf %5 : vector<16x128xf32>
    %7 = vector.shape_cast %6 : vector<16x128xf32> to vector<2x8x128xf32>
    %cst = arith.constant dense<0.000000e+00> : vector<8x128xf32>
    %8 = vector.multi_reduction <add>, %7, %cst [0] : vector<2x8x128xf32> to vector<8x128xf32>
    %c0_4 = arith.constant 0 : index
    %c0_5 = arith.constant 0 : index
    %c0_6 = arith.constant 0 : index
    %9 = vector.load %arg4[%c0_4, %c0_5, %c0_6] : memref<1x8x128xf32, #tpu.memory_space<vmem>>, vector<1x8x128xf32>
    %10 = vector.shape_cast %9 : vector<1x8x128xf32> to vector<8x128xf32>
    %11 = arith.addf %10, %8 : vector<8x128xf32>
    %c0_7 = arith.constant 0 : index
    %c0_8 = arith.constant 0 : index
    %c0_9 = arith.constant 0 : index
    %12 = vector.load %arg4[%c0_7, %c0_8, %c0_9] : memref<1x8x128xf32, #tpu.memory_space<vmem>>, vector<1x8x128xf32>
    %13 = vector.shape_cast %12 : vector<1x8x128xf32> to vector<8x128xf32>
    %14 = vector.shape_cast %11 : vector<8x128xf32> to vector<1x8x128xf32>
    tpu.vector_store %arg4[%c0_7, %c0_8, %c0_9], %14 {strides = array<i32>} : memref<1x8x128xf32, #tpu.memory_space<vmem>>, vector<1x8x128xf32>,
    return
  }
  func.func @transform_0(%arg0: i32, %arg1: i32) -> (i32, i32) {
    %c1_i32 = arith.constant 1 : i32
    %0 = arith.muli %arg0, %c1_i32 : i32
    %1 = arith.addi %0, %arg1 : i32
    %c0_i32 = arith.constant 0 : i32
    %2 = arith.minsi %1, %c0_i32 : i32
    %c0_i32_0 = arith.constant 0 : i32
    %c0_i32_1 = arith.constant 0 : i32
    return %2, %c0_i32_0 : i32, i32
  }
  func.func @transform_1(%arg0: i32, %arg1: i32) -> (i32, i32) {
    %c1_i32 = arith.constant 1 : i32
    %0 = arith.muli %arg0, %c1_i32 : i32
    %1 = arith.addi %0, %arg1 : i32
    %c0_i32 = arith.constant 0 : i32
    %2 = arith.minsi %1, %c0_i32 : i32
    %c0_i32_0 = arith.constant 0 : i32
    %c0_i32_1 = arith.constant 0 : i32
    return %2, %c0_i32_0 : i32, i32
  }
  func.func @transform_2(%arg0: i32, %arg1: i32) -> (i32, i32, i32) {
    %c0_i32 = arith.constant 0 : i32
    %c0_i32_0 = arith.constant 0 : i32
    %c0_i32_1 = arith.constant 0 : i32
    return %arg0, %c0_i32, %c0_i32_0 : i32, i32, i32
  }
}

</mosaic_0001>

<bundles_post_ra>
// kernel: l1_loss_pallas.1
= control target key start
LH: loop header
LB: loop body
LE: loop exit
PB: predicated region body
PF: predicated region fallthrough
CT: control target
= control target key end

     0   :  { %s139_s0 = inlined_call_operand.vmem [shape: f32[16,128], index: 0, kind: input, shape index: {}]   ;;  %s140_s1 = inlined_call_operand.vmem [shape: f32[16,128], index: 1, kind: input, shape index: {}]   ;;  %s141_s2 = inlined_call_operand.vmem [shape: f32[1,8,128], index: 2, kind: output, shape index: {}]  }
   0x1   :  { %v80_v0 = vld [vmem:[%s139_s0] sm:$0xff]  ;;  %v81_v1 = vld [vmem:[%s139_s0 + $0x8] sm:$0xff] }
   0x2   :  { %v82_v2 = vld [vmem:[%s140_s1] sm:$0xff]  ;;  %v83_v3 = vld [vmem:[%s140_s1 + $0x8] sm:$0xff] }
   0x3   :  { %v84_v4 = vsub.f32 %v80_v0, %v82_v2  ;;  %v85_v5 = vsub.f32 %v81_v1, %v83_v3 }
   0x5   :  { %v86_v6 = vand.u32 2147483647, %v84_v4  ;;  %v87_v7 = vand.u32 2147483647, %v85_v5 }
   0x7   :  { %v88_v8 = vadd.f32 %v87_v7, %v86_v6 }
   0x9   :  { %91 = vst [vmem:[%s141_s2] sm:$0xff] %v88_v8 }

</bundles_post_ra>
